<compile_context>
chip_gen: v5e
topology: v5e:2x2
jax: 0.10.0
libtpu: 0.0.40
codegen_flags: <defaults>
</compile_context>

<pallas_src>
import functools

import jax
import jax.numpy as jnp
from jax.experimental import pallas as pl
from jax.experimental.pallas import tpu as pltpu

LANE = 128


def _round_up(x, m):
    return ((x + m - 1) // m) * m


# ----------------------------- Pallas kernel ------------------------------- #

def _gcn_fused_kernel(*refs, num_layers, agg_first):
    """refs = (a_ref, dinv_ref, x_ref, w_1, b_1, ..., w_L, b_L, o_ref).

    a_ref   : (N, N)  bf16, A + remaining self-loops (UN-normalized).
    dinv_ref: (N, 1)  f32, D^{-1/2} (degrees include self-loops).
    x_ref   : (N, C0) f32 node features (no channel padding).
    w_i     : bf16 weights (only the last layer's output dim is lane-padded).
    b_i     : f32 (1, C) bias (BN folded in for hidden layers).
    o_ref   : (N, Cout_padded) f32.

    Per layer:  z = D^{-1/2} (A+I) D^{-1/2} @ H @ W + b
    computed either aggregation-first or transform-first (static choice):
      agg-first:       z = ((dinv * ((A+I) @ (dinv * H))) @ W) + b
      transform-first: z =  (dinv * ((A+I) @ (dinv * (H @ W)))) + b
    Hidden layers then apply ReLU (eval-mode dropout = identity).
    """
    a_ref, dinv_ref, x_ref, o_ref = refs[0], refs[1], refs[2], refs[-1]

    a = a_ref[...]                       # (N, N) bf16
    dinv = dinv_ref[...]                 # (N, 1) f32
    h = x_ref[...].astype(jnp.float32)   # (N, C) f32 running activations

    for li in range(num_layers):
        w = refs[3 + 2 * li][...]        # bf16 (cin, cout)
        b = refs[4 + 2 * li][...]        # f32  (1,  cout)
        if agg_first[li]:
            # Neighborhood aggregation first (narrow width = cin).
            hs = (dinv * h).astype(jnp.bfloat16)
            agg = dinv * jnp.dot(a, hs, preferred_element_type=jnp.float32)
            z = jnp.dot(agg.astype(jnp.bfloat16), w,
                        preferred_element_type=jnp.float32) + b
        else:
            # Feature transform first (narrow width = cout).
            xw = jnp.dot(h.astype(jnp.bfloat16), w,
                         preferred_element_type=jnp.float32)
            xw = (dinv * xw).astype(jnp.bfloat16)
            z = dinv * jnp.dot(a, xw, preferred_element_type=jnp.float32) + b

        if li < num_layers - 1:
            h = jnp.maximum(z, 0.0)      # ReLU in f32; dropout (eval) = id
        else:
            o_ref[...] = z


# ------------------------------- Glue (JAX) -------------------------------- #

def adjacency_with_self_loops(edge_index, edge_weight, num_nodes):
    """Dense (A + remaining self-loops) and dinv = D^{-1/2}.

    Matches PyG gcn_norm / add_remaining_self_loops: self-loops are only added
    for nodes that do not already have one (existing self-loop edges keep
    their weight and are not double-counted).
    """
    src, dst = edge_index[0], edge_index[1]
    if edge_weight is None:
        edge_weight = jnp.ones(src.shape[0], dtype=jnp.float32)
    a = jnp.zeros((num_nodes, num_nodes), dtype=jnp.float32)
    a = a.at[dst, src].add(edge_weight)                  # message flows src -> dst
    has_self = jnp.zeros((num_nodes,), jnp.float32).at[src].add(
        jnp.where(src == dst, 1.0, 0.0))
    fill = jnp.where(has_self > 0, 0.0, 1.0)             # only missing self-loops
    a = a + jnp.diag(fill)
    deg = a.sum(axis=1)
    dinv = jnp.where(deg > 0, jax.lax.rsqrt(deg), 0.0)
    return a, dinv


def _fold_bn(convs, bns, use_bn, eps):
    """Fold eval-mode BN into (W, b): W' = W*scale, b' = (b-mean)*scale + beta."""
    num_layers = len(convs)
    folded = []
    for li, (w, b) in enumerate(convs):
        if use_bn and li < num_layers - 1:
            mean, var, gamma, beta = bns[li]
            scale = gamma * jax.lax.rsqrt(var + eps)
            w = w * scale[None, :]
            b = (b - mean) * scale + beta
        folded.append((w, b))
    return folded


def gcn_forward(node_feat, edge_index, edge_weight, convs, bns,
                use_bn=True, eps=1e-5):
    """Full GCN forward: one fused Pallas kernel over all layers."""
    n = node_feat.shape[0]
    num_layers = len(convs)
    a_plus_i, dinv = adjacency_with_self_loops(edge_index, edge_weight, n)
    folded = _fold_bn(convs, bns, use_bn, eps)

    out_ch = folded[-1][0].shape[1]
    out_ch_p = _round_up(out_ch, LANE)     # lane-dense output => unmasked vst

    inputs = [a_plus_i.astype(jnp.bfloat16),
              dinv.reshape(n, 1).astype(jnp.float32),
              node_feat.astype(jnp.float32)]          # NO input-channel padding
    agg_first = []
    for li, (w, b) in enumerate(folded):
        cin, cout = w.shape
        if li == num_layers - 1:
            # Only the final output width is padded (zero columns are exact).
            w = jnp.pad(w, ((0, 0), (0, out_ch_p - cout)))
            b = jnp.pad(b, (0, out_ch_p - cout))
            cout_eff = out_ch_p
        else:
            cout_eff = cout
        agg_first.append(cin < cout_eff)   # static per-layer matmul ordering
        inputs += [w.astype(jnp.bfloat16),
                   b.reshape(1, -1).astype(jnp.float32)]

    kernel = functools.partial(_gcn_fused_kernel,
                               num_layers=num_layers,
                               agg_first=tuple(agg_first))

    # Tiny problem -> single grid step, full-array blocks (block == array shape
    # satisfies the (8,128) tiling rule); everything lives in VMEM for the
    # whole fused forward.  See TODO(synk) above for the tiled scaling path.
    in_specs = [pl.BlockSpec(a.shape, lambda i: (0, 0)) for a in inputs]
    out_spec = pl.BlockSpec((n, out_ch_p), lambda i: (0, 0))

    out_padded = pl.pallas_call(
        kernel,
        grid=(1,),
        in_specs=in_specs,
        out_specs=out_spec,
        out_shape=jax.ShapeDtypeStruct((n, out_ch_p), jnp.float32),
        compiler_params=pltpu.CompilerParams(
            dimension_semantics=("arbitrary",)),
    )(*inputs)
    return out_padded[:, :out_ch]


def gcn_reference(node_feat, edge_index, edge_weight, convs, bns,
                  use_bn=True, eps=1e-5):
    """Plain-JAX reference mirroring the kernel's precision path and ordering."""
    n = node_feat.shape[0]
    a, dinv = adjacency_with_self_loops(edge_index, edge_weight, n)
    a = a.astype(jnp.bfloat16)
    dinv = dinv.reshape(n, 1)
    folded = _fold_bn(convs, bns, use_bn, eps)
    num_layers = len(folded)
    h = node_feat.astype(jnp.float32)
    for li, (w, b) in enumerate(folded):
        cin, cout = w.shape
        cout_eff = _round_up(cout, LANE) if li == num_layers - 1 else cout
        w_b = w.astype(jnp.bfloat16)
        if cin < cout_eff:
            hs = (dinv * h).astype(jnp.bfloat16)
            agg = dinv * jnp.dot(a, hs, preferred_element_type=jnp.float32)
            z = jnp.dot(agg.astype(jnp.bfloat16), w_b,
                        preferred_element_type=jnp.float32) + b
        else:
            xw = jnp.dot(h.astype(jnp.bfloat16), w_b,
                         preferred_element_type=jnp.float32)
            xw = (dinv * xw).astype(jnp.bfloat16)
            z = dinv * jnp.dot(a, xw, preferred_element_type=jnp.float32) + b
        if li < num_layers - 1:
            h = jnp.maximum(z, 0.0)
        else:
            return z


def gcn_reference_f32(node_feat, edge_index, edge_weight, convs, bns,
                      use_bn=True, eps=1e-5):
    """Full-precision ground truth (no bf16), canonical A_hat @ X @ W + b."""
    n = node_feat.shape[0]
    a, dinv = adjacency_with_self_loops(edge_index, edge_weight, n)
    a_hat = dinv[:, None] * a * dinv[None, :]
    folded = _fold_bn(convs, bns, use_bn, eps)
    num_layers = len(folded)
    h = node_feat.astype(jnp.float32)
    for li, (w, b) in enumerate(folded):
        z = a_hat @ (h @ w) + b
        if li < num_layers - 1:
            h = jnp.maximum(z, 0.0)
        else:
            return z


def init_gcn_params(key, in_channels, hidden_channels, out_channels, num_layers=2):
    """Glorot W / zero bias (GCNConv reset) + BatchNorm1d defaults (eval stats)."""
    dims = [in_channels] + [hidden_channels] * (num_layers - 1) + [out_channels]
    convs, bns = [], []
    for li in range(num_layers):
        fan_in, fan_out = dims[li], dims[li + 1]
        key, wkey = jax.random.split(key)
        bound = (6.0 / (fan_in + fan_out)) ** 0.5
        w = jax.random.uniform(wkey, (fan_in, fan_out), jnp.float32, -bound, bound)
        b = jnp.zeros((fan_out,), jnp.float32)
        convs.append((w, b))
        if li < num_layers - 1:
            c = fan_out
            bns.append((jnp.zeros((c,), jnp.float32),   # running_mean
                        jnp.ones((c,), jnp.float32),    # running_var
                        jnp.ones((c,), jnp.float32),    # gamma
                        jnp.zeros((c,), jnp.float32)))  # beta
    return convs, bns


# ---------------------------------- Main ------------------------------------ #

if __name__ == "__main__":
    key = jax.random.PRNGKey(0)

    num_nodes = 16
    in_channels, hidden_channels, out_channels = 32, 32, 16
    num_edges = 48

    key, kfeat, ksrc, kdst, kparam = jax.random.split(key, 5)
    node_feat = jax.random.normal(kfeat, (num_nodes, in_channels), jnp.float32)
    src = jax.random.randint(ksrc, (num_edges,), 0, num_nodes)
    dst = jax.random.randint(kdst, (num_edges,), 0, num_nodes)
    edge_index = jnp.stack([src, dst], axis=0)     # [2, E]
    edge_weight = None                             # GCN forward default path

    convs, bns = init_gcn_params(kparam, in_channels, hidden_channels,
                                 out_channels, num_layers=2)

    out = gcn_forward(node_feat, edge_index, edge_weight, convs, bns, use_bn=True)
    out = jax.block_until_ready(out)

    assert out.shape == (num_nodes, out_channels)
    assert bool(jnp.all(jnp.isfinite(out)))

    # Correctness vs. a plain-JAX reference using the same bf16/f32 path...
    ref = gcn_reference(node_feat, edge_index, edge_weight, convs, bns, use_bn=True)
    max_err = float(jnp.max(jnp.abs(out - ref)))
    assert max_err < 5e-2, f"max abs err vs mirrored ref {max_err}"

    # ...and a sanity check against full-f32 ground truth (bf16 MXU operands
    # bound the deviation; loose tolerance).
    ref32 = gcn_reference_f32(node_feat, edge_index, edge_weight, convs, bns,
                              use_bn=True)
    max_err32 = float(jnp.max(jnp.abs(out - ref32)))
    assert max_err32 < 2.5e-1, f"max abs err vs f32 ref {max_err32}"

    print("KERNEL_OK")
</pallas_src>

<mosaic_0001>
module attributes {stable_mosaic.version = 11 : i64} {
  func.func @_gcn_fused_kernel(%arg0: i32, %arg1: memref<16x16xbf16, #tpu.memory_space<vmem>>, %arg2: memref<16x1xf32, #tpu.memory_space<vmem>>, %arg3: memref<16x32xf32, #tpu.memory_space<vmem>>, %arg4: memref<32x32xbf16, #tpu.memory_space<vmem>>, %arg5: memref<1x32xf32, #tpu.memory_space<vmem>>, %arg6: memref<32x128xbf16, #tpu.memory_space<vmem>>, %arg7: memref<1x128xf32, #tpu.memory_space<vmem>>, %arg8: memref<16x128xf32, #tpu.memory_space<vmem>>) attributes {dimension_semantics = [#tpu.dimension_semantics<arbitrary>], iteration_bounds = array<i64: 1>, scalar_prefetch = 0 : i64, scratch_operands = 0 : i64, tpu.core_type = #tpu.core_type<tc>, window_params = [{pipeline_mode = #tpu.pipeline_mode<synchronous>, transform_indices = @transform_0, window_bounds = array<i64: 16, 16>}, {pipeline_mode = #tpu.pipeline_mode<synchronous>, transform_indices = @transform_1, window_bounds = array<i64: 16, 1>}, {pipeline_mode = #tpu.pipeline_mode<synchronous>, transform_indices = @transform_2, window_bounds = array<i64: 16, 32>}, {pipeline_mode = #tpu.pipeline_mode<synchronous>, transform_indices = @transform_3, window_bounds = array<i64: 32, 32>}, {pipeline_mode = #tpu.pipeline_mode<synchronous>, transform_indices = @transform_4, window_bounds = array<i64: 1, 32>}, {pipeline_mode = #tpu.pipeline_mode<synchronous>, transform_indices = @transform_5, window_bounds = array<i64: 32, 128>}, {pipeline_mode = #tpu.pipeline_mode<synchronous>, transform_indices = @transform_6, window_bounds = array<i64: 1, 128>}, {pipeline_mode = #tpu.pipeline_mode<synchronous>, transform_indices = @transform_7, window_bounds = array<i64: 16, 128>}]} {
    %c0 = arith.constant 0 : index
    %c0_0 = arith.constant 0 : index
    %0 = vector.load %arg1[%c0, %c0_0] : memref<16x16xbf16, #tpu.memory_space<vmem>>, vector<16x16xbf16>
    %c0_1 = arith.constant 0 : index
    %c0_2 = arith.constant 0 : index
    %1 = vector.load %arg2[%c0_1, %c0_2] : memref<16x1xf32, #tpu.memory_space<vmem>>, vector<16x1xf32>
    %c0_3 = arith.constant 0 : index
    %c0_4 = arith.constant 0 : index
    %2 = vector.load %arg3[%c0_3, %c0_4] : memref<16x32xf32, #tpu.memory_space<vmem>>, vector<16x32xf32>
    %c0_5 = arith.constant 0 : index
    %c0_6 = arith.constant 0 : index
    %3 = vector.load %arg4[%c0_5, %c0_6] : memref<32x32xbf16, #tpu.memory_space<vmem>>, vector<32x32xbf16>
    %c0_7 = arith.constant 0 : index
    %c0_8 = arith.constant 0 : index
    %4 = vector.load %arg5[%c0_7, %c0_8] : memref<1x32xf32, #tpu.memory_space<vmem>>, vector<1x32xf32>
    %5 = arith.truncf %2 : vector<16x32xf32> to vector<16x32xbf16>
    %cst = arith.constant dense<0.000000e+00> : vector<16x32xf32>
    %6 = tpu.matmul %5, %3, %cst {dimension_numbers = #tpu.dot_dimension_numbers<[1], [0], [0], [1], [0, 0, 1, 1], [], []>} : vector<16x32xbf16>, vector<32x32xbf16>, vector<16x32xf32> -> vector<16x32xf32>
    %7 = vector.broadcast %1 : vector<16x1xf32> to vector<16x32xf32>
    %8 = arith.mulf %7, %6 : vector<16x32xf32>
    %9 = arith.truncf %8 : vector<16x32xf32> to vector<16x32xbf16>
    %cst_9 = arith.constant dense<0.000000e+00> : vector<16x32xf32>
    %10 = tpu.matmul %0, %9, %cst_9 {dimension_numbers = #tpu.dot_dimension_numbers<[1], [0], [0], [1], [0, 0, 1, 1], [], []>} : vector<16x16xbf16>, vector<16x32xbf16>, vector<16x32xf32> -> vector<16x32xf32>
    %11 = vector.broadcast %1 : vector<16x1xf32> to vector<16x32xf32>
    %12 = arith.mulf %11, %10 : vector<16x32xf32>
    %13 = vector.broadcast %4 : vector<1x32xf32> to vector<16x32xf32>
    %14 = arith.addf %12, %13 : vector<16x32xf32>
    %cst_10 = arith.constant 0.000000e+00 : f32
    %15 = vector.broadcast %cst_10 : f32 to vector<16x32xf32>
    %16 = arith.maximumf %14, %15 : vector<16x32xf32>
    %c0_11 = arith.constant 0 : index
    %c0_12 = arith.constant 0 : index
    %17 = vector.load %arg6[%c0_11, %c0_12] : memref<32x128xbf16, #tpu.memory_space<vmem>>, vector<32x128xbf16>
    %c0_13 = arith.constant 0 : index
    %c0_14 = arith.constant 0 : index
    %18 = vector.load %arg7[%c0_13, %c0_14] : memref<1x128xf32, #tpu.memory_space<vmem>>, vector<1x128xf32>
    %19 = vector.broadcast %1 : vector<16x1xf32> to vector<16x32xf32>
    %20 = arith.mulf %19, %16 : vector<16x32xf32>
    %21 = arith.truncf %20 : vector<16x32xf32> to vector<16x32xbf16>
    %cst_15 = arith.constant dense<0.000000e+00> : vector<16x32xf32>
    %22 = tpu.matmul %0, %21, %cst_15 {dimension_numbers = #tpu.dot_dimension_numbers<[1], [0], [0], [1], [0, 0, 1, 1], [], []>} : vector<16x16xbf16>, vector<16x32xbf16>, vector<16x32xf32> -> vector<16x32xf32>
    %23 = vector.broadcast %1 : vector<16x1xf32> to vector<16x32xf32>
    %24 = arith.mulf %23, %22 : vector<16x32xf32>
    %25 = arith.truncf %24 : vector<16x32xf32> to vector<16x32xbf16>
    %cst_16 = arith.constant dense<0.000000e+00> : vector<16x128xf32>
    %26 = tpu.matmul %25, %17, %cst_16 {dimension_numbers = #tpu.dot_dimension_numbers<[1], [0], [0], [1], [0, 0, 1, 1], [], []>} : vector<16x32xbf16>, vector<32x128xbf16>, vector<16x128xf32> -> vector<16x128xf32>
    %27 = vector.broadcast %18 : vector<1x128xf32> to vector<16x128xf32>
    %28 = arith.addf %26, %27 : vector<16x128xf32>
    %c0_17 = arith.constant 0 : index
    %c0_18 = arith.constant 0 : index
    %29 = vector.load %arg8[%c0_17, %c0_18] : memref<16x128xf32, #tpu.memory_space<vmem>>, vector<16x128xf32>
    tpu.vector_store %arg8[%c0_17, %c0_18], %28 {strides = array<i32>} : memref<16x128xf32, #tpu.memory_space<vmem>>, vector<16x128xf32>,
    return
  }
  func.func @transform_0(%arg0: i32) -> (i32, i32) {
    %c0_i32 = arith.constant 0 : i32
    %c0_i32_0 = arith.constant 0 : i32
    %c0_i32_1 = arith.constant 0 : i32
    return %c0_i32, %c0_i32_0 : i32, i32
  }
  func.func @transform_1(%arg0: i32) -> (i32, i32) {
    %c0_i32 = arith.constant 0 : i32
    %c0_i32_0 = arith.constant 0 : i32
    %c0_i32_1 = arith.constant 0 : i32
    return %c0_i32, %c0_i32_0 : i32, i32
  }
  func.func @transform_2(%arg0: i32) -> (i32, i32) {
    %c0_i32 = arith.constant 0 : i32
    %c0_i32_0 = arith.constant 0 : i32
    %c0_i32_1 = arith.constant 0 : i32
    return %c0_i32, %c0_i32_0 : i32, i32
  }
  func.func @transform_3(%arg0: i32) -> (i32, i32) {
    %c0_i32 = arith.constant 0 : i32
    %c0_i32_0 = arith.constant 0 : i32
    %c0_i32_1 = arith.constant 0 : i32
    return %c0_i32, %c0_i32_0 : i32, i32
  }
  func.func @transform_4(%arg0: i32) -> (i32, i32) {
    %c0_i32 = arith.constant 0 : i32
    %c0_i32_0 = arith.constant 0 : i32
    %c0_i32_1 = arith.constant 0 : i32
    return %c0_i32, %c0_i32_0 : i32, i32
  }
  func.func @transform_5(%arg0: i32) -> (i32, i32) {
    %c0_i32 = arith.constant 0 : i32
    %c0_i32_0 = arith.constant 0 : i32
    %c0_i32_1 = arith.constant 0 : i32
    return %c0_i32, %c0_i32_0 : i32, i32
  }
  func.func @transform_6(%arg0: i32) -> (i32, i32) {
    %c0_i32 = arith.constant 0 : i32
    %c0_i32_0 = arith.constant 0 : i32
    %c0_i32_1 = arith.constant 0 : i32
    return %c0_i32, %c0_i32_0 : i32, i32
  }
  func.func @transform_7(%arg0: i32) -> (i32, i32) {
    %c0_i32 = arith.constant 0 : i32
    %c0_i32_0 = arith.constant 0 : i32
    %c0_i32_1 = arith.constant 0 : i32
    return %c0_i32, %c0_i32_0 : i32, i32
  }
}

</mosaic_0001>

<bundles_post_ra>
// kernel: tpu_custom_call.1
= control target key start
LH: loop header
LB: loop body
LE: loop exit
PB: predicated region body
PF: predicated region fallthrough
CT: control target
= control target key end

     0   :  { %12 = vsyncpa [#allocation3], 0  ;;  %s465_s0 = inlined_call_operand.hbm [shape: bf16[16,16], index: 0, kind: input, shape index: {}]   ;;  %s466_s1 = inlined_call_operand.vmem [shape: f32[16,1], index: 1, kind: input, shape index: {}]   ;;  %s467_s2 = inlined_call_operand.vmem [shape: f32[16,32], index: 2, kind: input, shape index: {}]   ;;  %s468_s3 = inlined_call_operand.hbm [shape: bf16[32,32], index: 3, kind: input, shape index: {}]   ;;  %s469_s4 = inlined_call_operand.vmem [shape: f32[1,32], index: 4, kind: input, shape index: {}]   ;;  %s470_s5 = inlined_call_operand.hbm [shape: bf16[32,128], index: 5, kind: input, shape index: {}]   ;;  %s471_s6 = inlined_call_operand.vmem [shape: f32[1,128], index: 6, kind: input, shape index: {}]   ;;  %s472_s7 = inlined_call_operand.hbm [shape: f32[16,128], index: 7, kind: output, shape index: {}]  }
   0x1   :  { %13 = vsyncpa [#allocation6], 0 }
   0x2   :  { %14 = vsyncpa [#allocation4], 0  ;;  %s36_s26 = sshll.u32 %s468_s3, 4  ;;  %s384_s27 = smov [#allocation5]   ;;  %s37_s26 = int_to_ptr.hbm [resolvable:$true] %s36_s26 }
   0x3   :  { %s38_s28 = sshll.u32 %s384_s27, 4  ;;  %s19_s8 = sshll.u32 %s465_s0, 4  ;;  %s39_s28 = int_to_ptr.vmem [resolvable:$true] %s38_s28  ;;  %s20_s8 = int_to_ptr.hbm [resolvable:$true] %s19_s8 }
   0x4   :  { %s385_s9 = smov 64   ;;  %s386_s10 = smov 4  }
   0x5   :  { %44 = dma.hbm_to_vmem [thread:$0]  %s37_s26, 256, %s39_s28, [#allocation6], %s385_s9, %s385_s9, %s386_s10  }
   0x6   :  { %s387_s11 = smov [#allocation2]   ;;  %s51_s15 = sshll.u32 %s470_s5, 4  ;;  %s52_s15 = int_to_ptr.hbm [resolvable:$true] %s51_s15 }
   0x7   :  { %s21_s12 = sshll.u32 %s387_s11, 4  ;;  %s388_s3 = smov [#allocation7]   ;;  %s22_s12 = int_to_ptr.vmem [resolvable:$true] %s21_s12 }
   0x8   :  { %27 = dma.hbm_to_vmem [thread:$0]  %s20_s8, 128, %s22_s12, [#allocation3], %s385_s9, %s385_s9, %s386_s10  }
   0x9   :  { %s53_s16 = sshll.u32 %s388_s3, 4  ;;  %s54_s16 = int_to_ptr.vmem [resolvable:$true] %s53_s16 }
   0xa   :  { %59 = dma.hbm_to_vmem [thread:$0]  %s52_s15, 256, %s54_s16, [#allocation6], %s385_s9, %s385_s9, %s386_s10  }
   0xb   :  { %378 = dma.done.wait [#allocation3], 128  }
   0xc   :  { %379 = vsyncadd [#allocation3], 4294967168 }
   0xd   :  { %380 = dma.done.wait [#allocation6], 512  }
   0xe   :  { %381 = vsyncadd [#allocation6], 4294966784  ;;  %v389_v0 = vmov 0   ;;  %v267_v1 = vld [vmem:[#allocation5 + $0x8] sm:$0xff]  ;;  %v266_v2 = vld [vmem:[#allocation5] sm:$0xff]  ;;  %vm99_vm0 = vcmask 261120  }
   0xf   :  { %279 = vset.pattern.permute.xlu0 %v389_v0  ;;  %v79_v3 = vld [vmem:[%s467_s2] sm:$0xff]  ;;  %109 = vmatpush.bf16.msra.mxu0 %v267_v1  ;;  %v80_v5 = vld [vmem:[%s467_s2 + $0x8] sm:$0xff]  ;;  %vm135_vm1 = vcmask 130048   ;;  %v268_v29 = vld [vmem:[#allocation7] sm:$0xff]  ;;  %s390_s24 = smov [#allocation8]   ;;  %s227_s28 = sshll.u32 %s472_s7, 4  ;;  %s228_s28 = int_to_ptr.hbm [resolvable:$true] %s227_s28 }
  0x10   :  { %v77_v4 = vld [vmem:[%s466_s1] sm:$0xff]  ;;  %v86_v6 = vpack.c.bf16 %v80_v5, %v79_v3  ;;  %v78_v7 = vld [vmem:[%s466_s1 + $0x8] sm:$0xff]  ;;  %s225_s25 = sshll.u32 %s390_s24, 4  ;;  %s391_s29 = smov 128   ;;  %s226_s25 = int_to_ptr.vmem [resolvable:$true] %s225_s25 }
  0x11   :  { %119 = vperm.xlu0 %279, %v77_v4   ;;  %v265_v15 = vld [vmem:[#allocation2] sm:$0xff]  ;;  %s392_s30 = smov 8  }
  0x12   :  { %v280_v18 = vld [vmem:[%s469_s4] ss:$0 sm:$0xff] }
  0x13   :  { %110 = vmatpush.bf16.msra.mxu0 %v266_v2  ;;  %v269_v28 = vld [vmem:[#allocation7 + $0x8] sm:$0xff] }
  0x14   :  { %211 = vmatpush.bf16.msra.mxu3 %v269_v28  ;;  %v281_v35 = vld [vmem:[%s471_s6] ss:$0 sm:$0xff] }
  0x16   :  { %249 = vmatmul.msk.bf16.vlgmr.msra.gmra.mxu0 %vm99_vm0, %v86_v6 }
  0x18   :  { %212 = vmatpush.bf16.msra.mxu3 %v268_v29 }
  0x19   :  { %124 = vperm.xlu0 %279, %v78_v7  }
  0x83   :  { %v120_v8 = vpop.permute.xlu0 %119 }
  0x8b   :  { %v125_v10 = vpop.permute.xlu0 %124 }
  0x93   :  { %v112_v9 = vpop.f32.mrf.mxu0 }
  0x94   :  { %v127_v12 = vmul.f32 %v120_v8, %v112_v9 }
  0x9b   :  { %v114_v11 = vpop.f32.mrf.mxu0 }
  0x9c   :  { %v128_v13 = vmul.f32 %v125_v10, %v114_v11 }
  0x9e   :  { %v129_v14 = vpack.c.bf16 %v128_v13, %v127_v12 }
  0xa0   :  { %146 = vmatpush.bf16.msra.mxu1 %v129_v14 }
  0xa3   :  { %254 = vmatmul.msk.bf16.vlgmr.msra.gmra.mxu1 %vm135_vm1, %v265_v15 }
 0x120   :  { %v148_v16 = vpop.f32.mrf.mxu1 }
 0x121   :  { %v153_v17 = vmul.f32 %v148_v16, %v120_v8 }
 0x123   :  { %v158_v19 = vadd.f32 %v280_v18, %v153_v17 }
 0x125   :  { %v160_v22 = vmax.f32 %v158_v19, 0.0 }
 0x127   :  { %v167_v25 = vmul.f32 %v160_v22, %v120_v8 }
 0x128   :  { %v150_v20 = vpop.f32.mrf.mxu1 }
 0x129   :  { %v154_v21 = vmul.f32 %v150_v20, %v125_v10 }
 0x12b   :  { %v159_v23 = vadd.f32 %v280_v18, %v154_v21 }
 0x12d   :  { %v161_v24 = vmax.f32 %v159_v23, 0.0 }
 0x12f   :  { %v168_v26 = vmul.f32 %v161_v24, %v125_v10 }
 0x131   :  { %v169_v27 = vpack.c.bf16 %v168_v26, %v167_v25 }
 0x133   :  { %177 = vmatpush.bf16.msra.mxu2 %v169_v27 }
 0x136   :  { %255 = vmatmul.msk.bf16.vlgmr.msra.gmra.mxu2 %vm135_vm1, %v265_v15 }
 0x1b9   :  { %v179_v30 = vpop.f32.mrf.mxu2 }
 0x1ba   :  { %v184_v32 = vmul.f32 %v179_v30, %v120_v8 }
 0x1c1   :  { %v181_v31 = vpop.f32.mrf.mxu2 }
 0x1c2   :  { %v185_v33 = vmul.f32 %v181_v31, %v125_v10 }
 0x1c4   :  { %v186_v34 = vpack.c.bf16 %v185_v33, %v184_v32 }
 0x1c6   :  { %264 = vmatmul.msk.bf16.vlgmr.msra.gmra.mxu3 %vm99_vm0, %v186_v34 }
 0x249   :  { %v214_v36 = vpop.f32.mrf.mxu3 }
 0x24a   :  { %v215_v37 = vadd.f32 %v281_v35, %v214_v36 }
 0x24c   :  { %219 = vst [vmem:[#allocation8] sm:$0xff] %v215_v37 }
 0x251   :  { %v216_v38 = vpop.f32.mrf.mxu3 }
 0x252   :  { %v217_v39 = vadd.f32 %v281_v35, %v216_v38 }
 0x254   :  { %220 = vst [vmem:[#allocation8 + $0x8] sm:$0xff] %v217_v39 }
 0x255   :  { %233 = dma.vmem_to_hbm [thread:$0]  %s226_s25, 256, %s228_s28, [#allocation4], %s391_s29, %s391_s29, %s392_s30  }
 0x256   :  { %382 = dma.done.wait [#allocation4], 256  }
 0x257   :  { %383 = vsyncadd [#allocation4], 4294967040 }
 0x258   :  { %238 = vsyncpa [#allocation3], 1 }
 0x259   :  { %239 = vsyncpa [#allocation6], 1 }
 0x25a   :  { %240 = vsyncpa [#allocation4], 1 }

</bundles_post_ra>
